<compile_context>
chip_gen: v7x
topology: tpu7x:2x2x1
jax: 0.10.0
libtpu: 0.0.40
codegen_flags: <defaults>
</compile_context>

<pallas_src>
import jax
import jax.numpy as jnp
from jax.experimental import pallas as pl
from jax.experimental.pallas import tpu as pltpu

BN_EPS = 1e-5


def _round_up(x, m):
    return (x + m - 1) // m * m


# --------------------------------------------------------------------------------------
# Kernel: one batch tile of  relu(x_aug @ W1_folded) @ W2  + BN2 partial statistics
# --------------------------------------------------------------------------------------
def _mlp_fwd_kernel(xa_ref, w1_ref, w2_ref, y_ref, psum_ref, psumsq_ref):
    w1 = w1_ref[...]
    w2 = w2_ref[...]
    # With f32 operands request a true f32 matmul; bf16 operands are exact on the MXU.
    prec = jax.lax.Precision.HIGHEST if w1.dtype == jnp.float32 else None

    # Linear 1 (MXU).  BN1 scale is pre-folded into W1's columns, BN1 shift into W1's
    # extra last row (matched by the ones-column of x_aug).  Padded batch rows of
    # x_aug are all-zero, so they yield h == 0 exactly.
    h = jnp.dot(xa_ref[...], w1, preferred_element_type=jnp.float32, precision=prec)

    # Folded BatchNorm1 is already inside W1 -> just ReLU (VPU).
    a = jnp.maximum(h, 0.0)

    # Linear 2 (MXU), narrow (d_out) output.
    y = jnp.dot(a.astype(w2.dtype), w2, preferred_element_type=jnp.float32,
                precision=prec)

    # BN2 partial statistics from the in-register f32 y (padded rows contribute 0),
    # finalized in the wrapper.
    psum_ref[...] = jnp.sum(y, axis=0, keepdims=True)[None]
    psumsq_ref[...] = jnp.sum(y * y, axis=0, keepdims=True)[None]

    # Store the pre-BN2 intermediate narrow + in bf16 (re-read once by the wrapper).
    y_ref[...] = y.astype(y_ref.dtype)


# --------------------------------------------------------------------------------------
# Wrapper
# --------------------------------------------------------------------------------------
def regressor_pallas(x, params, *, matmul_dtype=jnp.bfloat16, batch_tile=1024,
                     interpret=False):
    """Full regressor MLP: (rows, obs_len*2) f32 -> (rows, pred_len*2) f32."""
    w1, b1, g1, be1, w2, b2, g2, be2 = params
    del b1, b2  # Linear biases cancel exactly under training-mode BatchNorm.

    x = x.astype(jnp.float32)
    n_rows, d_in = x.shape
    d_hid = w1.shape[1]
    d_out = w2.shape[1]

    # ---- batch tiling: 1-D "parallel" grid; keep nb >= 2 when possible (v7x 2 TCs) --
    tb = min(_round_up(max(batch_tile, 1), 8), _round_up(pl.cdiv(n_rows, 2), 8))
    n_pad = _round_up(n_rows, tb)
    nb = n_pad // tb

    # ---- x_aug = [x | 1]; padded rows are exactly zero (incl. the ones column) ------
    if n_pad == n_rows:
        xa = jnp.concatenate([x, jnp.ones((n_rows, 1), jnp.float32)], axis=1)
    else:
        xa = jnp.zeros((n_pad, d_in + 1), jnp.float32)
        xa = xa.at[:n_rows, :d_in].set(x)
        xa = xa.at[:n_rows, d_in].set(1.0)

    # ---- BatchNorm1 batch statistics from ONE Gram sweep over x_aug -----------------
    #   Gram = x_aug^T x_aug  ->  Gram[:d,:d] = X^T X ,  Gram[d,:d] = sum(x)
    #   mean(h) = mean(x) @ W1 ,  E[h^2] = diag(W1^T (X^T X) W1) / N
    n = jnp.float32(n_rows)
    gram = jnp.dot(xa.T, xa, precision="highest")                # (d_in+1, d_in+1)
    mean_x = gram[d_in:d_in + 1, :d_in] / n                      # (1, d_in)
    xtx = gram[:d_in, :d_in]                                     # (d_in, d_in)
    mean1 = jnp.dot(mean_x, w1, precision="highest")             # (1, d_hid)
    ex2_1 = jnp.sum(w1 * jnp.dot(xtx, w1, precision="highest"),
                    axis=0, keepdims=True) / n
    var1 = jnp.maximum(ex2_1 - mean1 * mean1, 0.0)
    scale1 = g1 * jax.lax.rsqrt(var1 + BN_EPS)                   # (1, d_hid)
    shift1 = be1 - mean1 * scale1

    # ---- fold BN1 into W1 (scale the columns, append the shift row), cast operands --
    w1f = jnp.concatenate([w1 * scale1, shift1], axis=0)         # (d_in+1, d_hid)
    xa_c = xa.astype(matmul_dtype)
    w1_c = w1f.astype(matmul_dtype)
    w2_c = w2.astype(matmul_dtype)

    mosaic_params = None if interpret else pltpu.CompilerParams(
        dimension_semantics=("parallel",),
        vmem_limit_bytes=48 * 1024 * 1024,
    )

    op_bytes = jnp.dtype(matmul_dtype).itemsize
    cost = pl.CostEstimate(
        flops=2 * n_pad * d_hid * (d_in + 1 + d_out) + 3 * n_pad * d_out,
        transcendentals=0,
        bytes_accessed=n_pad * (d_in + 1) * op_bytes
        + nb * ((d_in + 1) * d_hid + d_hid * d_out) * op_bytes
        + n_pad * d_out * op_bytes + 8 * nb * d_out,
    )

    # ---- Pass 1 (Pallas): Linear1 + folded BN1 + ReLU + Linear2, BN2 partial stats --
    y, psum, psumsq = pl.pallas_call(
        _mlp_fwd_kernel,
        grid=(nb,),
        in_specs=[
            pl.BlockSpec((tb, d_in + 1), lambda b: (b, 0)),       # x_aug tile
            pl.BlockSpec((d_in + 1, d_hid), lambda b: (0, 0)),    # folded W1 (resident)
            pl.BlockSpec((d_hid, d_out), lambda b: (0, 0)),       # W2 (resident)
        ],
        out_specs=(
            pl.BlockSpec((tb, d_out), lambda b: (b, 0)),          # y (pre-BN2, narrow)
            pl.BlockSpec((1, 1, d_out), lambda b: (b, 0, 0)),     # per-tile sum(y)
            pl.BlockSpec((1, 1, d_out), lambda b: (b, 0, 0)),     # per-tile sum(y*y)
        ),
        out_shape=(
            jax.ShapeDtypeStruct((n_pad, d_out), matmul_dtype),
            jax.ShapeDtypeStruct((nb, 1, d_out), jnp.float32),
            jax.ShapeDtypeStruct((nb, 1, d_out), jnp.float32),
        ),
        compiler_params=mosaic_params,
        cost_estimate=cost,
        interpret=interpret,
    )(xa_c, w1_c, w2_c)

    # ---- finalize BatchNorm2 statistics (tiny (1, d_out) math) ----------------------
    sum_y = jnp.sum(psum, axis=0)                                 # (1, d_out)
    sumsq_y = jnp.sum(psumsq, axis=0)
    mean2 = sum_y / n
    var2 = jnp.maximum(sumsq_y / n - mean2 * mean2, 0.0)
    scale2 = g2 * jax.lax.rsqrt(var2 + BN_EPS)
    shift2 = be2 - mean2 * scale2

    # ---- folded BN2 + ReLU: trivial elementwise, left to XLA so it fuses with the
    # ---- row slice and the downstream (pred_len, batch, 2) reshape (perf review) ----
    out = jnp.maximum(y[:n_rows].astype(jnp.float32) * scale2 + shift2, 0.0)
    return out


# --------------------------------------------------------------------------------------
# Module wrapper
# --------------------------------------------------------------------------------------
class TrajectoryLinearRegressorPallas:
    """Pallas TPU port of sgan TrajectoryLinearRegressor (forward only)."""

    def __init__(self, obs_len, pred_len, embedding_dim=64, mlp_dim=1024,
                 key=None, matmul_dtype=jnp.bfloat16, batch_tile=1024):
        self.obs_len = obs_len
        self.pred_len = pred_len
        self.mlp_dim = mlp_dim
        self.embedding_dim = embedding_dim
        self.matmul_dtype = matmul_dtype
        self.batch_tile = batch_tile
        d_in, d_hid, d_out = obs_len * 2, mlp_dim, pred_len * 2

        if key is None:
            key = jax.random.PRNGKey(0)
        k1, k2, k3, k4 = jax.random.split(key, 4)
        # Weights stored pre-transposed as (in_features, out_features), f32 master copy.
        w1 = jax.random.normal(k1, (d_in, d_hid), jnp.float32) * 0.05
        b1 = jax.random.normal(k2, (1, d_hid), jnp.float32) * 0.01
        g1 = jnp.ones((1, d_hid), jnp.float32)        # BN1 weight
        be1 = jnp.zeros((1, d_hid), jnp.float32)      # BN1 bias
        w2 = jax.random.normal(k3, (d_hid, d_out), jnp.float32) * 0.05
        b2 = jax.random.normal(k4, (1, d_out), jnp.float32) * 0.01
        g2 = jnp.ones((1, d_out), jnp.float32)        # BN2 weight
        be2 = jnp.zeros((1, d_out), jnp.float32)      # BN2 bias
        self.params = (w1, b1, g1, be1, w2, b2, g2, be2)

    def __call__(self, obs_traj, obs_traj_rel, seq_start_end, user_noise=None):
        # Mirrors the PyTorch forward exactly (obs_traj / seq_start_end unused).
        batch = obs_traj_rel.shape[1]
        inp = obs_traj_rel.reshape(-1, self.obs_len * 2)        # (batch, obs_len*2)
        out = regressor_pallas(inp, self.params,
                               matmul_dtype=self.matmul_dtype,
                               batch_tile=self.batch_tile)
        return out.reshape(-1, batch, 2)                        # (pred_len, batch, 2)


# --------------------------------------------------------------------------------------
# Plain-JAX module reference (faithful: with Linear biases, direct BN batch stats)
# --------------------------------------------------------------------------------------
def _reference_forward(model, obs_traj_rel):
    w1, b1, g1, be1, w2, b2, g2, be2 = model.params
    x = obs_traj_rel.reshape(-1, model.obs_len * 2).astype(jnp.float32)

    def bn(h, g, be):
        m = jnp.mean(h, axis=0, keepdims=True)
        v = jnp.mean((h - m) ** 2, axis=0, keepdims=True)
        return (h - m) * jax.lax.rsqrt(v + BN_EPS) * g + be

    h = jnp.maximum(bn(jnp.dot(x, w1, precision="highest") + b1, g1, be1), 0.0)
    y = jnp.maximum(bn(jnp.dot(h, w2, precision="highest") + b2, g2, be2), 0.0)
    return y.reshape(-1, obs_traj_rel.shape[1], 2)


if __name__ == "__main__":
    obs_len, pred_len, batch = 8, 8, 20
    mlp_dim = 128   # small hidden dim for the demo (module default is 1024)

    key = jax.random.PRNGKey(0)
    k_obs, k_rel, k_param = jax.random.split(key, 3)
    obs_traj = jax.random.normal(k_obs, (obs_len, batch, 2), jnp.float32)
    obs_traj_rel = jax.random.normal(k_rel, (obs_len, batch, 2), jnp.float32)
    seq_start_end = jnp.array([[0, batch]], jnp.int32)

    # Tiny batch tile so the demo exercises the multi-tile grid + zero-row-padding path.
    model = TrajectoryLinearRegressorPallas(obs_len, pred_len, mlp_dim=mlp_dim,
                                            key=k_param, batch_tile=8)

    ref = _reference_forward(model, obs_traj_rel)

    # ---- real TPU run (bf16 MXU operands + bf16 y store): loose tolerance -----------
    pred = model(obs_traj, obs_traj_rel, seq_start_end)
    pred = jax.block_until_ready(pred)
    assert pred.shape == (pred_len, batch, 2), pred.shape
    assert jnp.allclose(pred, ref, atol=1e-1, rtol=1e-1), \
        float(jnp.max(jnp.abs(pred - ref)))

    # ---- tight semantic check: same wrapper/kernel, interpreter mode, f32 matmuls ---
    inp = obs_traj_rel.reshape(-1, obs_len * 2)
    out_interp = regressor_pallas(inp, model.params, matmul_dtype=jnp.float32,
                                  batch_tile=8, interpret=True)
    out_interp = jax.block_until_ready(out_interp)
    assert jnp.allclose(out_interp, ref.reshape(batch, pred_len * 2),
                        atol=1e-3, rtol=1e-3), \
        float(jnp.max(jnp.abs(out_interp - ref.reshape(batch, pred_len * 2))))

    print("KERNEL_OK")
</pallas_src>

<mosaic_0001>
module attributes {stable_mosaic.version = 11 : i64} {
  func.func @_mlp_fwd_kernel(%arg0: i32, %arg1: memref<8x17xbf16, #tpu.memory_space<vmem>>, %arg2: memref<17x128xbf16, #tpu.memory_space<vmem>>, %arg3: memref<128x16xbf16, #tpu.memory_space<vmem>>, %arg4: memref<8x16xbf16, #tpu.memory_space<vmem>>, %arg5: memref<1x1x16xf32, #tpu.memory_space<vmem>>, %arg6: memref<1x1x16xf32, #tpu.memory_space<vmem>>) attributes {dimension_semantics = [#tpu.dimension_semantics<parallel>], iteration_bounds = array<i64: 3>, scalar_prefetch = 0 : i64, scratch_operands = 0 : i64, tpu.core_type = #tpu.core_type<tc>, window_params = [{transform_indices = @transform_0, window_bounds = array<i64: 8, 17>}, {pipeline_mode = #tpu.pipeline_mode<synchronous>, transform_indices = @transform_1, window_bounds = array<i64: 17, 128>}, {pipeline_mode = #tpu.pipeline_mode<synchronous>, transform_indices = @transform_2, window_bounds = array<i64: 128, 16>}, {transform_indices = @transform_3, window_bounds = array<i64: 8, 16>}, {transform_indices = @transform_4, window_bounds = array<i64: 1, 1, 16>}, {transform_indices = @transform_5, window_bounds = array<i64: 1, 1, 16>}]} {
    %c0 = arith.constant 0 : index
    %c0_0 = arith.constant 0 : index
    %0 = vector.load %arg2[%c0, %c0_0] : memref<17x128xbf16, #tpu.memory_space<vmem>>, vector<17x128xbf16>
    %c0_1 = arith.constant 0 : index
    %c0_2 = arith.constant 0 : index
    %1 = vector.load %arg3[%c0_1, %c0_2] : memref<128x16xbf16, #tpu.memory_space<vmem>>, vector<128x16xbf16>
    %c0_3 = arith.constant 0 : index
    %c0_4 = arith.constant 0 : index
    %2 = vector.load %arg1[%c0_3, %c0_4] : memref<8x17xbf16, #tpu.memory_space<vmem>>, vector<8x17xbf16>
    %cst = arith.constant dense<0.000000e+00> : vector<8x128xf32>
    %3 = tpu.matmul %2, %0, %cst {dimension_numbers = #tpu.dot_dimension_numbers<[1], [0], [0], [1], [0, 0, 1, 1], [], []>} : vector<8x17xbf16>, vector<17x128xbf16>, vector<8x128xf32> -> vector<8x128xf32>
    %cst_5 = arith.constant 0.000000e+00 : f32
    %4 = vector.broadcast %cst_5 : f32 to vector<8x128xf32>
    %5 = arith.maximumf %3, %4 : vector<8x128xf32>
    %6 = arith.truncf %5 : vector<8x128xf32> to vector<8x128xbf16>
    %cst_6 = arith.constant dense<0.000000e+00> : vector<8x16xf32>
    %7 = tpu.matmul %6, %1, %cst_6 {dimension_numbers = #tpu.dot_dimension_numbers<[1], [0], [0], [1], [0, 0, 1, 1], [], []>} : vector<8x128xbf16>, vector<128x16xbf16>, vector<8x16xf32> -> vector<8x16xf32>
    %cst_7 = arith.constant dense<0.000000e+00> : vector<16xf32>
    %8 = vector.multi_reduction <add>, %7, %cst_7 [0] : vector<8x16xf32> to vector<16xf32>
    %9 = vector.shape_cast %8 : vector<16xf32> to vector<1x16xf32>
    %10 = vector.shape_cast %9 : vector<1x16xf32> to vector<1x1x16xf32>
    %c0_8 = arith.constant 0 : index
    %c0_9 = arith.constant 0 : index
    %c0_10 = arith.constant 0 : index
    %11 = vector.load %arg5[%c0_8, %c0_9, %c0_10] : memref<1x1x16xf32, #tpu.memory_space<vmem>>, vector<1x1x16xf32>
    tpu.vector_store %arg5[%c0_8, %c0_9, %c0_10], %10 {strides = array<i32>} : memref<1x1x16xf32, #tpu.memory_space<vmem>>, vector<1x1x16xf32>,
    %12 = arith.mulf %7, %7 : vector<8x16xf32>
    %cst_11 = arith.constant dense<0.000000e+00> : vector<16xf32>
    %13 = vector.multi_reduction <add>, %12, %cst_11 [0] : vector<8x16xf32> to vector<16xf32>
    %14 = vector.shape_cast %13 : vector<16xf32> to vector<1x16xf32>
    %15 = vector.shape_cast %14 : vector<1x16xf32> to vector<1x1x16xf32>
    %c0_12 = arith.constant 0 : index
    %c0_13 = arith.constant 0 : index
    %c0_14 = arith.constant 0 : index
    %16 = vector.load %arg6[%c0_12, %c0_13, %c0_14] : memref<1x1x16xf32, #tpu.memory_space<vmem>>, vector<1x1x16xf32>
    tpu.vector_store %arg6[%c0_12, %c0_13, %c0_14], %15 {strides = array<i32>} : memref<1x1x16xf32, #tpu.memory_space<vmem>>, vector<1x1x16xf32>,
    %17 = arith.truncf %7 : vector<8x16xf32> to vector<8x16xbf16>
    %c0_15 = arith.constant 0 : index
    %c0_16 = arith.constant 0 : index
    %18 = vector.load %arg4[%c0_15, %c0_16] : memref<8x16xbf16, #tpu.memory_space<vmem>>, vector<8x16xbf16>
    tpu.vector_store %arg4[%c0_15, %c0_16], %17 {strides = array<i32>} : memref<8x16xbf16, #tpu.memory_space<vmem>>, vector<8x16xbf16>,
    return
  }
  func.func @transform_0(%arg0: i32) -> (i32, i32) {
    %c0_i32 = arith.constant 0 : i32
    %c0_i32_0 = arith.constant 0 : i32
    return %arg0, %c0_i32 : i32, i32
  }
  func.func @transform_1(%arg0: i32) -> (i32, i32) {
    %c0_i32 = arith.constant 0 : i32
    %c0_i32_0 = arith.constant 0 : i32
    %c0_i32_1 = arith.constant 0 : i32
    return %c0_i32, %c0_i32_0 : i32, i32
  }
  func.func @transform_2(%arg0: i32) -> (i32, i32) {
    %c0_i32 = arith.constant 0 : i32
    %c0_i32_0 = arith.constant 0 : i32
    %c0_i32_1 = arith.constant 0 : i32
    return %c0_i32, %c0_i32_0 : i32, i32
  }
  func.func @transform_3(%arg0: i32) -> (i32, i32) {
    %c0_i32 = arith.constant 0 : i32
    %c0_i32_0 = arith.constant 0 : i32
    return %arg0, %c0_i32 : i32, i32
  }
  func.func @transform_4(%arg0: i32) -> (i32, i32, i32) {
    %c0_i32 = arith.constant 0 : i32
    %c0_i32_0 = arith.constant 0 : i32
    %c0_i32_1 = arith.constant 0 : i32
    return %arg0, %c0_i32, %c0_i32_0 : i32, i32, i32
  }
  func.func @transform_5(%arg0: i32) -> (i32, i32, i32) {
    %c0_i32 = arith.constant 0 : i32
    %c0_i32_0 = arith.constant 0 : i32
    %c0_i32_1 = arith.constant 0 : i32
    return %arg0, %c0_i32, %c0_i32_0 : i32, i32, i32
  }
}

</mosaic_0001>

<bundles_post_ra>
// kernel: tpu_custom_call.1
= control target key start
LH: loop header
LB: loop body
LE: loop exit
PB: predicated region body
PF: predicated region fallthrough
CT: control target
= control target key end

     0   :  { %11 = vsyncpa [#allocation3], 0  ;;  %s1004_s0 = inlined_call_operand.vmem [shape: bf16[24,17], index: 0, kind: input, shape index: {}]   ;;  %s1005_s1 = inlined_call_operand.vmem [shape: bf16[17,128], index: 1, kind: input, shape index: {}]   ;;  %s1006_s2 = inlined_call_operand.vmem [shape: bf16[128,16], index: 2, kind: input, shape index: {}]   ;;  %s1007_s3 = inlined_call_operand.vmem [shape: bf16[24,16], index: 3, kind: output, shape index: {0}]   ;;  %s1008_s4 = inlined_call_operand.hbm [shape: f32[3,1,16], index: 4, kind: output, shape index: {1}]   ;;  %s1009_s5 = inlined_call_operand.hbm [shape: f32[3,1,16], index: 5, kind: output, shape index: {2}]  }
   0x1   :  { %13 = vsyncpa [#allocation3 + $0x1], 0 }
   0x2   :  { %14 = vsyncpa [#allocation5], 0 }
   0x3   :  { %16 = vsyncpa [#allocation5 + $0x1], 0  ;;  %s824_s18 = smov 0   ;;  %s826_s19 = smov 0  }
   0x4   :  { %s828_s20 = smov 0   ;;  %s830_s21 = smov 0  }
   0x5 LB: > { %s845_s22 = sadd.s32 4294967295, %s787_s21   ;;  %s575_s23 = sadd.s32 4294967294, %s787_s21   ;;  %s787_s21 = sphi %s830_s21, %s1015_s21   ;;  %s783_s20 = sphi %s828_s20, %s1014_s20   ;;  %s779_s19 = sphi %s826_s19, %s1013_s19   ;;  %s775_s18 = sphi %s824_s18, %s1012_s18  }
   0x6   : > { %s849_s24 = sadd.s32 1, %s787_s21   ;;  %s123_s25 = sadd.s32 1, %s783_s20 }
   0x7   : > { %s120_s26 = ssub.s32 %s787_s21, %s849_s24  ;;  %p133_p0 = scmp.ne.s32.totalorder %s783_s20, %s779_s19 }
   0x8   : > { %p121_p1 = scmp.eq.s32.totalorder %s120_s26, 0  ;;  %p134_p2 = scmp.eq.s32.totalorder %s845_s22, 2 }
   0x9   : > { %p139_p3 = scmp.ne.s32.totalorder %s779_s19, %s775_s18  ;;  %p140_p4 = scmp.eq.s32.totalorder %s575_s23, 2 }
   0xa   : > { %s860_s27 = scalar_select %p121_p1, %s783_s20, %s123_s25  }
   0xb   : > { %p862_p5 = por %p134_p2, %p133_p0  ;;  %p866_p6 = por %p140_p4, %p139_p3 }
   0xc   : > { %p578_p7 = scmp.ge.s32.totalorder %s787_s21, 1  ;;  %p197_p8 = scmp.lt.s32.totalorder %s787_s21, 4 }
   0xe   : > { %p198_p9 = pnand %p578_p7, %p197_p8 }
   0xf   : > { %v683_v0 = vld [vmem:[%s1005_s1] sm:$0xff] (!%p198_p9)   ;;  %v789_v1 = vmov (!%p198_p9), 0.0   ;;  %v684_v2 = vld [vmem:[%s1005_s1 + $0x8] ss:$0 sps:$4 sm:$0x11] (!%p198_p9)   ;;  %vm273_vm0 = vcmask (!%p198_p9), 1040384  }
  0x10   : > { %201 = sbr.rel (%p198_p9) target bundleno = 506 (0x1fa), region = 32  ;;  %608 = vmatprep.subr.bf16.mxu0 (!%p198_p9), %v789_v1  ;;  %616 = vmatprep.subr.bf16.mxu1 (!%p198_p9), %v789_v1  ;;  %p231_p10 = scmp.lt.s32.totalorder (!%p198_p9), %s845_s22, 2  ;;  %v790_v3 = vmov (!%p198_p9), 0   ;;  %vm791_vm1 = vmmov (!%p198_p9), 0   ;;  %v685_v5 = vld [vmem:[%s1006_s2] sm:$0xff] (!%p198_p9)   ;;  %v686_v7 = vld [vmem:[%s1006_s2 + $0x8] sm:$0xff] (!%p198_p9)  }
  0x11   : > { %609 = vmatpush3.bf16.msra.mxu0 (!%p198_p9), %v683_v0  ;;  %v275_v4 = vsel (!%p198_p9), %vm273_vm0, 65535, %v790_v3  ;;  %612 = vmatprep.mubr.msk.bf16.mxu0 (!%p198_p9), %vm791_vm1, %v789_v1  ;;  %vm269_vm2 = vcmask (!%p198_p9), 138240   ;;  %v687_v9 = vld [vmem:[%s1006_s2 + $0x10] sm:$0xff] (!%p198_p9)   ;;  %v688_v10 = vld [vmem:[%s1006_s2 + $0x18] sm:$0xff] (!%p198_p9)   ;;  %v689_v11 = vld [vmem:[%s1006_s2 + $0x20] sm:$0xff] (!%p198_p9)   ;;  %vm409_vm3 = vcmask (!%p198_p9), 130048  }
  0x12   : > { %610 = vmatprep.subr.bf16.mxu0 (!%p198_p9), %v789_v1  ;;  %v277_v6 = vand.u32 (!%p198_p9), %v684_v2, %v275_v4  ;;  %632 = vmatprep.mubr.msk.bf16.mxu1 (!%p198_p9), %vm791_vm1, %v789_v1  ;;  %v690_v12 = vld [vmem:[%s1006_s2 + $0x28] sm:$0xff] (!%p198_p9)   ;;  %v691_v13 = vld [vmem:[%s1006_s2 + $0x30] sm:$0xff] (!%p198_p9)   ;;  %v692_v14 = vld [vmem:[%s1006_s2 + $0x38] sm:$0xff] (!%p198_p9)   ;;  %vm429_vm4 = vcmask (!%p198_p9), 125952   ;;  %s918_s25 = sand.u32 (!%p198_p9), 1, %s779_s19   ;;  %vm417_vm5 = vcmask (!%p198_p9), 122880  }
  0x13   : > { %617 = vmatpush3.bf16.msra.mxu1 (!%p198_p9), %v685_v5  ;;  %s230_s30 = scalar_lea.vmem (!%p198_p9), [#allocation4], %s918_s25  ;;  %s436_s13 = scalar_lea.sflag (!%p198_p9), [#allocation3], %s918_s25 }
  0x14   : > { %618 = vmatprep.subr.bf16.mxu1 (!%p198_p9), %v789_v1  ;;  %s468_s6 = sshll.u32 (!%p198_p9), %s230_s30, 4  ;;  %s792_s16 = smov (!%p198_p9), [#allocation2]   ;;  %s938_s6 = int_to_ptr.vmem [resolvable:$true] %s468_s6 }
  0x15   : > { %611 = vmatpush3.bf16.msra.mxu0 (!%p198_p9), %v277_v6 }
  0x17   : > { %s883_s11 = scalar_select %p231_p10, %s845_s22, 2  ;;  %619 = vmatpush3.bf16.msra.mxu1 %v686_v7 }
  0x18   : > { %620 = vmatprep.subr.bf16.mxu1 %v789_v1 }
  0x19   : > { %s579_s14 = sshll.u32 %s883_s11, 2  ;;  %s592_s11 = sshll.u32 %s845_s22, 4 }
  0x1a   : > { %s234_s17 = scalar_lea.vmem %s1004_s0, %s579_s14  ;;  %s238_s23 = scalar_lea.vmem %s1007_s3, %s579_s14 }
  0x1b   : > { %v259_v8 = vld [vmem:[%s234_s17] sm:$0xf]  ;;  %621 = vmatpush3.bf16.msra.mxu1 %v687_v9  ;;  %s224_s14 = scalar_lea.vmem [#allocation2], %s918_s25  ;;  %s928_s9 = scalar_lea.hbm %s1008_s4, %s592_s11 }
  0x1c   : > { %613 = vmatmul.mubr.msk.bf16.vlgmr.msra.gmra.mrb[0].mxu0 %vm269_vm2, %v259_v8  ;;  %622 = vmatprep.subr.bf16.mxu1 %v789_v1  ;;  %s455_s26 = sshll.u32 %s224_s14, 4  ;;  %s936_s12 = scalar_lea.hbm %s1009_s5, %s592_s11  ;;  %s930_s26 = int_to_ptr.vmem [resolvable:$true] %s455_s26 }
  0x1d   : > { %s693_s15 = scalar_lea.vmem %s930_s26, 16  ;;  %s697_s17 = sshll.u32 %s792_s16, 4  ;;  %s698_s17 = int_to_ptr.vmem [resolvable:$false] %s697_s17 }
  0x1e   : > { %p694_p11 = scmp.ne.s32.totalorder %s930_s26, %s693_s15  ;;  %p700_p0 = scmp.lt.s32.totalorder %s930_s26, %s698_s17 }
  0x1f   : > { %623 = vmatpush3.bf16.msra.mxu1 %v688_v10 }
  0x20   : > { %624 = vmatprep.subr.bf16.mxu1 %v789_v1  ;;  %p695_p12 = pnand %p694_p11, %p862_p5 }
  0x22   : > { %p696_p13 = pneg %p695_p12 }
  0x23   : > { %625 = vmatpush3.bf16.msra.mxu1 %v689_v11 }
  0x24   : > { %626 = vmatprep.subr.bf16.mxu1 %v789_v1 }
  0x27   : > { %627 = vmatpush3.bf16.msra.mxu1 %v690_v12 }
  0x28   : > { %628 = vmatprep.subr.bf16.mxu1 %v789_v1 }
  0x2b   : > { %629 = vmatpush3.bf16.msra.mxu1 %v691_v13 }
  0x2c   : > { %630 = vmatprep.subr.bf16.mxu1 %v789_v1 }
  0x2f   : > { %631 = vmatpush3.bf16.msra.mxu1 %v692_v14 }
  0xef   : > { %v313_v15 = vpop.f32.mrb[0].mxu0 }
  0xf0   : > { %v319_v16 = vmax.f32 %v313_v15, 0.0  ;;  %v614_v17 = vpop.f32.mrb[1].mxu0 }
  0xf1   : > { %v316_v18 = vpop.f32.mrb[2].mxu0 }
  0xf2   : > { %v320_v19 = vpack.c.bf16 %v319_v16, %v319_v16  ;;  %v615_v20 = vpop.f32.mrb[3].mxu0 }
  0xf4   : > { %633 = vmatmul.mubr.bf16.vlgmr.msra.gmra.mrb[0].mxu1 %v320_v19 }
 0x1c7   : > { %v403_v21 = vpop.f32.mrb[0].mxu1 }
 0x1c8   : > { %v410_v22 = vsel %vm409_vm3, %v403_v21, 0.0  ;;  %v419_v23 = vmul.f32 %v403_v21, %v403_v21  ;;  %v428_v24 = vpack.c.bf16 %v403_v21, %v403_v21  ;;  %v634_v25 = vpop.f32.mrb[1].mxu1 }
 0x1c9   : > { %v411_v26 = vrot.slane %v410_v22, 4  ;;  %v406_v27 = vpop.f32.mrb[2].mxu1 }
 0x1ca   : > { %v420_v28 = vsel %vm409_vm3, %v419_v23, 0.0  ;;  %430 = vst.msk [vmem:[%s238_s23] sm:$0xf] %vm429_vm4, %v428_v24  ;;  %v635_v29 = vpop.f32.mrb[3].mxu1  ;;  %s699_s23 = scalar_lea.vmem %s698_s17, 32 }
 0x1cb   : > { %v412_v30 = vadd.f32 %v411_v26, %v410_v22  ;;  %v421_v31 = vrot.slane %v420_v28, 4  ;;  %p701_p1 = scmp.lt.s32.totalorder %s699_s23, %s693_s15 }
 0x1cd   : > { %v413_v32 = vrot.slane %v412_v30, 2  ;;  %v422_v33 = vadd.f32 %v421_v31, %v420_v28  ;;  %p702_p2 = por %p701_p1, %p700_p0 }
 0x1cf   : > { %v414_v34 = vadd.f32 %v413_v32, %v412_v30  ;;  %v423_v35 = vrot.slane %v422_v33, 2  ;;  %p703_p3 = pnand %p702_p2, %p696_p13 }
 0x1d1   : > { %v415_v36 = vrot.slane %v414_v34, 1  ;;  %v424_v37 = vadd.f32 %v423_v35, %v422_v33 }
 0x1d3   : > { %v416_v38 = vadd.f32 %v415_v36, %v414_v34  ;;  %v425_v39 = vrot.slane %v424_v37, 1 }
 0x1d5   : > { %418 = vst.msk [vmem:[%s224_s14] sm:$0x1] %vm417_vm5, %v416_v38  ;;  %v426_v40 = vadd.f32 %v425_v39, %v424_v37 }
 0x1d6   : > { %706 = shalt.err (!%p703_p3)
}
 0x1d7   : > { %s707_s11 = scalar_lea.hbm %s928_s9, 16  ;;  %s711_s8 = scalar_lea.hbm %s1008_s4, 48 }
 0x1d8   : > { %p708_p4 = scmp.ne.s32.totalorder %s928_s9, %s707_s11  ;;  %p712_p9 = scmp.lt.u32.totalorder %s928_s9, %s1008_s4 }
 0x1d9   : > { %p713_p10 = scmp.lt.u32.totalorder %s711_s8, %s707_s11  ;;  %p715_p12 = scmp.lt.u32.totalorder %s707_s11, %s928_s9 }
 0x1da   : > { %p709_p7 = pnand %p708_p4, %p862_p5 }
 0x1db   : > { %p714_p11 = por %p713_p10, %p712_p9 }
 0x1dc   : > { %p710_p8 = pneg %p709_p7 }
 0x1dd   : > { %p716_p13 = por %p715_p12, %p714_p11 }
 0x1df   : > { %p717_p0 = pnand %p716_p13, %p710_p8 }
 0x1e1   : > { %720 = shalt.err (!%p717_p0)
}
 0x1e2   : > { %636 = dma.vmem_to_hbm [thread:$0]  (%p862_p5), %s930_s26, 16, %s928_s9, %s436_s13   ;;  %427 = vst.msk [vmem:[%s230_s30] sm:$0x1] %vm417_vm5, %v426_v40 }
 0x1e3   : > { %s440_s15 = scalar_lea.sflag [#allocation5], %s918_s25  ;;  %s721_s16 = scalar_lea.vmem %s938_s6, 16 }
 0x1e4   : > { %p722_p1 = scmp.ne.s32.totalorder %s938_s6, %s721_s16  ;;  %s793_s17 = smov [#allocation4]  }
 0x1e5   : > { %s725_s23 = sshll.u32 %s793_s17, 4  ;;  %s726_s23 = int_to_ptr.vmem [resolvable:$false] %s725_s23 }
 0x1e6   : > { %p723_p2 = pnand %p722_p1, %p862_p5  ;;  %s727_s11 = scalar_lea.vmem %s726_s23, 32 }
 0x1e7   : > { %p728_p4 = scmp.lt.s32.totalorder %s938_s6, %s726_s23  ;;  %p729_p7 = scmp.lt.s32.totalorder %s727_s11, %s721_s16 }
 0x1e8   : > { %p724_p3 = pneg %p723_p2 }
 0x1e9   : > { %p730_p8 = por %p729_p7, %p728_p4 }
 0x1eb   : > { %p731_p9 = pnand %p730_p8, %p724_p3 }
 0x1ed   : > { %734 = shalt.err (!%p731_p9)
}
 0x1ee   : > { %s735_s25 = scalar_lea.hbm %s936_s12, 16  ;;  %s739_s9 = scalar_lea.hbm %s1009_s5, 48 }
 0x1ef   : > { %p736_p10 = scmp.ne.s32.totalorder %s936_s12, %s735_s25  ;;  %p740_p13 = scmp.lt.u32.totalorder %s936_s12, %s1009_s5 }
 0x1f0   : > { %p741_p0 = scmp.lt.u32.totalorder %s739_s9, %s735_s25  ;;  %p743_p2 = scmp.lt.u32.totalorder %s735_s25, %s936_s12 }
 0x1f1   : > { %p737_p11 = pnand %p736_p10, %p862_p5 }
 0x1f2   : > { %p742_p1 = por %p741_p0, %p740_p13 }
 0x1f3   : > { %p738_p12 = pneg %p737_p11 }
 0x1f4   : > { %p744_p3 = por %p743_p2, %p742_p1 }
 0x1f6   : > { %p745_p4 = pnand %p744_p3, %p738_p12 }
 0x1f8   : > { %748 = shalt.err (!%p745_p4)
}
 0x1f9   : > { %637 = dma.vmem_to_hbm [thread:$0]  (%p862_p5), %s938_s6, 16, %s936_s12, %s440_s15  }
 0x1fa PF: > { %p647_p7 = scmp.ge.s32.totalorder %s787_s21, 2  ;;  %s487_s7 = sand.u32 1, %s775_s18  }
 0x1fb   : > { %s488_s8 = scalar_lea.sflag [#allocation3], %s487_s7 }
 0x1fc   : > { %p641_p8 = pnand %p647_p7, %p866_p6 }
 0x1fe   : > { %766 = dma.done.wait (!%p641_p8), %s488_s8, 16  }
 0x1ff   : > { %768 = vsyncadd (!%p641_p8), %s488_s8, 4294967280  ;;  %s496_s22 = scalar_lea.sflag [#allocation5], %s487_s7 }
 0x200   : > { %770 = dma.done.wait (!%p641_p8), %s496_s22, 16  }
 0x201   : > { %772 = vsyncadd (!%p641_p8), %s496_s22, 4294967280  ;;  %p19_p5 = scmp.ge.s32.totalorder %s849_s24, 5   ;;  %s1012_s18 = smov %s779_s19 }
 0x202   : > { %s1013_s19 = smov %s783_s20  ;;  %s1014_s20 = smov %s860_s27 }
 0x203   : > { %s1015_s21 = smov %s849_s24  ;;  %21 = sbr.rel (!%p19_p5) target bundleno = 5 (0x5), region = 96 }
 0x20a   :  { %500 = vsyncpa [#allocation3], 1 }
 0x20b   :  { %502 = vsyncpa [#allocation3 + $0x1], 1 }
 0x20c   :  { %503 = vsyncpa [#allocation5], 1 }
 0x20d   :  { %505 = vsyncpa [#allocation5 + $0x1], 1 }

</bundles_post_ra>
